<compile_context>
chip_gen: v7x
topology: tpu7x:2x2x1
jax: 0.10.0
libtpu: 0.0.40
codegen_flags: <defaults>
</compile_context>

<pallas_src>
from functools import partial

import jax
import jax.numpy as jnp
from jax.experimental import pallas as pl
from jax.experimental.pallas import tpu as pltpu


def _round_up(x, m):
    return ((x + m - 1) // m) * m


def _zerodep_kernel(x_ref, w_ref, e_ref, b_ref, out_ref, xpad_ref, xstk_ref, *, wp):
    """One batch element per grid step.

    x_ref   : (1, Cin, H, W)        raw (unpadded) input block, native dtype.
    w_ref   : (Cout, 9*Cin) bf16    stacked tap weights w1[co,ci]*wd[ci,dh,dw], col = t*Cin+ci.
    e_ref   : (Cout, 1) f32         exp(3*scale), applied in the f32 epilogue.
    b_ref   : (Cout, 1) f32         folded bias exp(3*scale)*(w1 @ bd + b1).
    out_ref : (1, Cout, Lpad)       flat output at padded row stride wp; Lpad % 128 == 0,
                                    lanes >= H*wp and cols W..wp-1 of each row are junk
                                    (dropped by the wrapper slice).
    xpad_ref: (Cin, Lin) f32        scratch: flat padded image (pad value 1).
    xstk_ref: (9*Cin, Lpad) f32     scratch: K-stacked shifted tap views.
    """
    cin, h, wimg = x_ref.shape[1], x_ref.shape[2], x_ref.shape[3]
    lpad = out_ref.shape[2]

    # ---- fused F.pad(value=1): build the flat padded image in VMEM (no HBM pad pass).
    # Re-initialized every grid step so the batch axis stays safely "parallel".
    xpad_ref[...] = jnp.ones_like(xpad_ref)
    xv = x_ref[0].astype(xpad_ref.dtype)                    # (Cin, H, W)
    for r in range(h):                                      # static unroll
        off = (r + 1) * wp + 1                              # 1 top pad row, 1 left pad col
        xpad_ref[:, off:off + wimg] = xv[:, r, :]

    # ---- stack the 9 shifted tap views along K (rows t*Cin .. t*Cin+Cin-1).
    for t in range(9):                                      # static unroll
        dh, dw = divmod(t, 3)
        off = dh * wp + dw
        xstk_ref[t * cin:(t + 1) * cin, :] = xpad_ref[:, off:off + lpad]

    # ---- single MXU matmul: (Cout, 9*Cin) @ (9*Cin, Lpad), bf16 in, f32 accumulation.
    y = jnp.dot(w_ref[...], xstk_ref[...].astype(jnp.bfloat16),
                preferred_element_type=jnp.float32)

    # ---- f32 epilogue: per-channel exp(3*scale) and folded bias (one FMA per vreg).
    y = y * e_ref[...] + b_ref[...]
    out_ref[0] = y.astype(out_ref.dtype)


def zerodep_conv2d(x_nchw, wd, bd, w1, b1, scale):
    """x_nchw: (B, Cin, H, W); wd: (Cin,1,3,3); bd: (Cin,); w1: (Cout,Cin,1,1);
    b1: (Cout,); scale: (1,Cout,1,1).  Returns (B, Cout, H, W), NCHW like PyTorch."""
    B, Cin, H, W = x_nchw.shape
    Cout = w1.shape[0]
    Wp = W + 2                               # padded row stride of the flat layout
    Lout = H * Wp                            # valid flat output length
    Lpad = _round_up(Lout, 128)              # lane-dense (unmasked) output stores
    # Padded-image scratch must cover the largest shifted view: max tap offset is
    # 2*Wp + 2; every lane past the stored data stays at the pad value 1.
    Lin = _round_up(2 * Wp + 2 + Lpad, 128)

    f32 = jnp.float32
    # ---- fold parameters in the wrapper (all in f32).
    e = jnp.exp(3.0 * scale.reshape(Cout).astype(f32))                       # (Cout,)
    w1f = w1[:, :, 0, 0].astype(f32)                                         # (Cout, Cin)
    wdt = wd[:, 0, :, :].astype(f32).reshape(Cin, 9)                         # (Cin, 9), t = dh*3+dw
    w_stack = jnp.transpose(wdt.T[:, None, :] * w1f[None, :, :], (1, 0, 2))  # (Cout, 9, Cin)
    w_stack = w_stack.reshape(Cout, 9 * Cin).astype(jnp.bfloat16)            # K-stacked, col = t*Cin+ci
    e_col = e.reshape(Cout, 1)                                               # epilogue scale (f32)
    b_eff = (e * (w1f @ bd.astype(f32) + b1.astype(f32))).reshape(Cout, 1)   # folded bias (f32)

    out_flat = pl.pallas_call(
        partial(_zerodep_kernel, wp=Wp),
        out_shape=jax.ShapeDtypeStruct((B, Cout, Lpad), x_nchw.dtype),
        grid=(B,),
        in_specs=[
            pl.BlockSpec((1, Cin, H, W), lambda b: (b, 0, 0, 0)),     # raw input, no wrapper pad
            pl.BlockSpec((Cout, 9 * Cin), lambda b: (0, 0)),          # stacked bf16 weights
            pl.BlockSpec((Cout, 1), lambda b: (0, 0)),                # exp(3*scale)
            pl.BlockSpec((Cout, 1), lambda b: (0, 0)),                # folded bias
        ],
        out_specs=pl.BlockSpec((1, Cout, Lpad), lambda b: (b, 0, 0)),
        scratch_shapes=[
            pltpu.VMEM((Cin, Lin), jnp.float32),        # flat padded image
            pltpu.VMEM((9 * Cin, Lpad), jnp.float32),   # K-stacked tap views
        ],
        compiler_params=pltpu.CompilerParams(
            dimension_semantics=("parallel",),          # batch axis shards across TCs (v7x)
            vmem_limit_bytes=32 * 1024 * 1024,          # tiny blocks; safe on 64 MiB v7x VMEM
        ),
    )(x_nchw, w_stack, e_col, b_eff)

    # Drop padded-stride junk: lanes >= Lout, then cols W..Wp-1 of each row.
    return out_flat[:, :, :Lout].reshape(B, Cout, H, Wp)[:, :, :, :W]


def _reference(x_nchw, wd, bd, w1, b1, scale):
    """Plain-JAX f32 reference mirroring the PyTorch forward (NCHW)."""
    xp = jnp.pad(x_nchw, ((0, 0), (0, 0), (1, 1), (1, 1)), constant_values=1.0)
    y = jax.lax.conv_general_dilated(
        xp, wd, window_strides=(1, 1), padding='VALID',
        dimension_numbers=('NCHW', 'OIHW', 'NCHW'),
        feature_group_count=x_nchw.shape[1])
    y = y + bd[None, :, None, None]
    z = jax.lax.conv_general_dilated(
        y, w1, window_strides=(1, 1), padding='VALID',
        dimension_numbers=('NCHW', 'OIHW', 'NCHW'))
    z = z + b1[None, :, None, None]
    return z * jnp.exp(scale * 3.0)


if __name__ == "__main__":
    B, Cin, H, W = 2, 4, 16, 16
    Cout = 8

    key = jax.random.PRNGKey(0)
    kx, kwd, kbd, kw1, kb1, ks = jax.random.split(key, 6)

    x = jax.random.normal(kx, (B, Cin, H, W), dtype=jnp.float32)

    # NOTE: the PyTorch __init__ zeroes all parameters; initialize them with small
    # nonzero values here so the kernel math is actually exercised.
    wd = 0.1 * jax.random.normal(kwd, (Cin, 1, 3, 3), dtype=jnp.float32)     # depthwise
    bd = 0.1 * jax.random.normal(kbd, (Cin,), dtype=jnp.float32)
    w1 = 0.1 * jax.random.normal(kw1, (Cout, Cin, 1, 1), dtype=jnp.float32)  # 1x1
    b1 = 0.1 * jax.random.normal(kb1, (Cout,), dtype=jnp.float32)
    scale = 0.1 * jax.random.normal(ks, (1, Cout, 1, 1), dtype=jnp.float32)

    out = jax.jit(zerodep_conv2d)(x, wd, bd, w1, b1, scale)
    out = jax.block_until_ready(out)

    ref = _reference(x, wd, bd, w1, b1, scale)
    assert out.shape == (B, Cout, H, W)
    # bf16 MXU path -> tolerance looser than pure f32 (accumulation/epilogue are f32).
    max_err = float(jnp.max(jnp.abs(out - ref)))
    assert jnp.allclose(out, ref, atol=1e-2, rtol=1e-2), f"mismatch vs reference (max abs err {max_err})"

    print("KERNEL_OK")
</pallas_src>

<mosaic_0001>
module attributes {stable_mosaic.version = 11 : i64} {
  func.func @_zerodep_kernel(%arg0: i32, %arg1: memref<1x4x16x16xf32, #tpu.memory_space<vmem>>, %arg2: memref<8x36xbf16, #tpu.memory_space<vmem>>, %arg3: memref<8x1xf32, #tpu.memory_space<vmem>>, %arg4: memref<8x1xf32, #tpu.memory_space<vmem>>, %arg5: memref<1x8x384xf32, #tpu.memory_space<vmem>>, %arg6: memref<4x512xf32, #tpu.memory_space<vmem>>, %arg7: memref<36x384xf32, #tpu.memory_space<vmem>>) attributes {dimension_semantics = [#tpu.dimension_semantics<parallel>], iteration_bounds = array<i64: 2>, scalar_prefetch = 0 : i64, scratch_operands = 2 : i64, tpu.core_type = #tpu.core_type<tc>, window_params = [{transform_indices = @transform_0, window_bounds = array<i64: 1, 4, 16, 16>}, {pipeline_mode = #tpu.pipeline_mode<synchronous>, transform_indices = @transform_1, window_bounds = array<i64: 8, 36>}, {pipeline_mode = #tpu.pipeline_mode<synchronous>, transform_indices = @transform_2, window_bounds = array<i64: 8, 1>}, {pipeline_mode = #tpu.pipeline_mode<synchronous>, transform_indices = @transform_3, window_bounds = array<i64: 8, 1>}, {transform_indices = @transform_4, window_bounds = array<i64: 1, 8, 384>}]} {
    %cst = arith.constant 1.000000e+00 : f32
    %0 = vector.broadcast %cst : f32 to vector<4x512xf32>
    %c0 = arith.constant 0 : index
    %c0_0 = arith.constant 0 : index
    %1 = vector.load %arg6[%c0, %c0_0] : memref<4x512xf32, #tpu.memory_space<vmem>>, vector<4x512xf32>
    tpu.vector_store %arg6[%c0, %c0_0], %0 {strides = array<i32>} : memref<4x512xf32, #tpu.memory_space<vmem>>, vector<4x512xf32>,
    %c0_1 = arith.constant 0 : index
    %c0_2 = arith.constant 0 : index
    %c0_3 = arith.constant 0 : index
    %c0_4 = arith.constant 0 : index
    %2 = vector.load %arg1[%c0_1, %c0_2, %c0_3, %c0_4] : memref<1x4x16x16xf32, #tpu.memory_space<vmem>>, vector<1x4x16x16xf32>
    %3 = vector.shape_cast %2 : vector<1x4x16x16xf32> to vector<4x16x16xf32>
    %4 = vector.extract_strided_slice %3 {offsets = [0, 0, 0], sizes = [4, 1, 16], strides = [1, 1, 1]} : vector<4x16x16xf32> to vector<4x1x16xf32>
    %5 = vector.shape_cast %4 : vector<4x1x16xf32> to vector<4x16xf32>
    %c0_5 = arith.constant 0 : index
    %c19 = arith.constant 19 : index
    %6 = vector.load %arg6[%c0_5, %c19] : memref<4x512xf32, #tpu.memory_space<vmem>>, vector<4x16xf32>
    tpu.vector_store %arg6[%c0_5, %c19], %5 {strides = array<i32>} : memref<4x512xf32, #tpu.memory_space<vmem>>, vector<4x16xf32>,
    %7 = vector.extract_strided_slice %3 {offsets = [0, 1, 0], sizes = [4, 1, 16], strides = [1, 1, 1]} : vector<4x16x16xf32> to vector<4x1x16xf32>
    %8 = vector.shape_cast %7 : vector<4x1x16xf32> to vector<4x16xf32>
    %c0_6 = arith.constant 0 : index
    %c37 = arith.constant 37 : index
    %9 = vector.load %arg6[%c0_6, %c37] : memref<4x512xf32, #tpu.memory_space<vmem>>, vector<4x16xf32>
    tpu.vector_store %arg6[%c0_6, %c37], %8 {strides = array<i32>} : memref<4x512xf32, #tpu.memory_space<vmem>>, vector<4x16xf32>,
    %10 = vector.extract_strided_slice %3 {offsets = [0, 2, 0], sizes = [4, 1, 16], strides = [1, 1, 1]} : vector<4x16x16xf32> to vector<4x1x16xf32>
    %11 = vector.shape_cast %10 : vector<4x1x16xf32> to vector<4x16xf32>
    %c0_7 = arith.constant 0 : index
    %c55 = arith.constant 55 : index
    %12 = vector.load %arg6[%c0_7, %c55] : memref<4x512xf32, #tpu.memory_space<vmem>>, vector<4x16xf32>
    tpu.vector_store %arg6[%c0_7, %c55], %11 {strides = array<i32>} : memref<4x512xf32, #tpu.memory_space<vmem>>, vector<4x16xf32>,
    %13 = vector.extract_strided_slice %3 {offsets = [0, 3, 0], sizes = [4, 1, 16], strides = [1, 1, 1]} : vector<4x16x16xf32> to vector<4x1x16xf32>
    %14 = vector.shape_cast %13 : vector<4x1x16xf32> to vector<4x16xf32>
    %c0_8 = arith.constant 0 : index
    %c73 = arith.constant 73 : index
    %15 = vector.load %arg6[%c0_8, %c73] : memref<4x512xf32, #tpu.memory_space<vmem>>, vector<4x16xf32>
    tpu.vector_store %arg6[%c0_8, %c73], %14 {strides = array<i32>} : memref<4x512xf32, #tpu.memory_space<vmem>>, vector<4x16xf32>,
    %16 = vector.extract_strided_slice %3 {offsets = [0, 4, 0], sizes = [4, 1, 16], strides = [1, 1, 1]} : vector<4x16x16xf32> to vector<4x1x16xf32>
    %17 = vector.shape_cast %16 : vector<4x1x16xf32> to vector<4x16xf32>
    %c0_9 = arith.constant 0 : index
    %c91 = arith.constant 91 : index
    %18 = vector.load %arg6[%c0_9, %c91] : memref<4x512xf32, #tpu.memory_space<vmem>>, vector<4x16xf32>
    tpu.vector_store %arg6[%c0_9, %c91], %17 {strides = array<i32>} : memref<4x512xf32, #tpu.memory_space<vmem>>, vector<4x16xf32>,
    %19 = vector.extract_strided_slice %3 {offsets = [0, 5, 0], sizes = [4, 1, 16], strides = [1, 1, 1]} : vector<4x16x16xf32> to vector<4x1x16xf32>
    %20 = vector.shape_cast %19 : vector<4x1x16xf32> to vector<4x16xf32>
    %c0_10 = arith.constant 0 : index
    %c109 = arith.constant 109 : index
    %21 = vector.load %arg6[%c0_10, %c109] : memref<4x512xf32, #tpu.memory_space<vmem>>, vector<4x16xf32>
    tpu.vector_store %arg6[%c0_10, %c109], %20 {strides = array<i32>} : memref<4x512xf32, #tpu.memory_space<vmem>>, vector<4x16xf32>,
    %22 = vector.extract_strided_slice %3 {offsets = [0, 6, 0], sizes = [4, 1, 16], strides = [1, 1, 1]} : vector<4x16x16xf32> to vector<4x1x16xf32>
    %23 = vector.shape_cast %22 : vector<4x1x16xf32> to vector<4x16xf32>
    %c0_11 = arith.constant 0 : index
    %c127 = arith.constant 127 : index
    %24 = vector.load %arg6[%c0_11, %c127] : memref<4x512xf32, #tpu.memory_space<vmem>>, vector<4x16xf32>
    tpu.vector_store %arg6[%c0_11, %c127], %23 {strides = array<i32>} : memref<4x512xf32, #tpu.memory_space<vmem>>, vector<4x16xf32>,
    %25 = vector.extract_strided_slice %3 {offsets = [0, 7, 0], sizes = [4, 1, 16], strides = [1, 1, 1]} : vector<4x16x16xf32> to vector<4x1x16xf32>
    %26 = vector.shape_cast %25 : vector<4x1x16xf32> to vector<4x16xf32>
    %c0_12 = arith.constant 0 : index
    %c145 = arith.constant 145 : index
    %27 = vector.load %arg6[%c0_12, %c145] : memref<4x512xf32, #tpu.memory_space<vmem>>, vector<4x16xf32>
    tpu.vector_store %arg6[%c0_12, %c145], %26 {strides = array<i32>} : memref<4x512xf32, #tpu.memory_space<vmem>>, vector<4x16xf32>,
    %28 = vector.extract_strided_slice %3 {offsets = [0, 8, 0], sizes = [4, 1, 16], strides = [1, 1, 1]} : vector<4x16x16xf32> to vector<4x1x16xf32>
    %29 = vector.shape_cast %28 : vector<4x1x16xf32> to vector<4x16xf32>
    %c0_13 = arith.constant 0 : index
    %c163 = arith.constant 163 : index
    %30 = vector.load %arg6[%c0_13, %c163] : memref<4x512xf32, #tpu.memory_space<vmem>>, vector<4x16xf32>
    tpu.vector_store %arg6[%c0_13, %c163], %29 {strides = array<i32>} : memref<4x512xf32, #tpu.memory_space<vmem>>, vector<4x16xf32>,
    %31 = vector.extract_strided_slice %3 {offsets = [0, 9, 0], sizes = [4, 1, 16], strides = [1, 1, 1]} : vector<4x16x16xf32> to vector<4x1x16xf32>
    %32 = vector.shape_cast %31 : vector<4x1x16xf32> to vector<4x16xf32>
    %c0_14 = arith.constant 0 : index
    %c181 = arith.constant 181 : index
    %33 = vector.load %arg6[%c0_14, %c181] : memref<4x512xf32, #tpu.memory_space<vmem>>, vector<4x16xf32>
    tpu.vector_store %arg6[%c0_14, %c181], %32 {strides = array<i32>} : memref<4x512xf32, #tpu.memory_space<vmem>>, vector<4x16xf32>,
    %34 = vector.extract_strided_slice %3 {offsets = [0, 10, 0], sizes = [4, 1, 16], strides = [1, 1, 1]} : vector<4x16x16xf32> to vector<4x1x16xf32>
    %35 = vector.shape_cast %34 : vector<4x1x16xf32> to vector<4x16xf32>
    %c0_15 = arith.constant 0 : index
    %c199 = arith.constant 199 : index
    %36 = vector.load %arg6[%c0_15, %c199] : memref<4x512xf32, #tpu.memory_space<vmem>>, vector<4x16xf32>
    tpu.vector_store %arg6[%c0_15, %c199], %35 {strides = array<i32>} : memref<4x512xf32, #tpu.memory_space<vmem>>, vector<4x16xf32>,
    %37 = vector.extract_strided_slice %3 {offsets = [0, 11, 0], sizes = [4, 1, 16], strides = [1, 1, 1]} : vector<4x16x16xf32> to vector<4x1x16xf32>
    %38 = vector.shape_cast %37 : vector<4x1x16xf32> to vector<4x16xf32>
    %c0_16 = arith.constant 0 : index
    %c217 = arith.constant 217 : index
    %39 = vector.load %arg6[%c0_16, %c217] : memref<4x512xf32, #tpu.memory_space<vmem>>, vector<4x16xf32>
    tpu.vector_store %arg6[%c0_16, %c217], %38 {strides = array<i32>} : memref<4x512xf32, #tpu.memory_space<vmem>>, vector<4x16xf32>,
    %40 = vector.extract_strided_slice %3 {offsets = [0, 12, 0], sizes = [4, 1, 16], strides = [1, 1, 1]} : vector<4x16x16xf32> to vector<4x1x16xf32>
    %41 = vector.shape_cast %40 : vector<4x1x16xf32> to vector<4x16xf32>
    %c0_17 = arith.constant 0 : index
    %c235 = arith.constant 235 : index
    %42 = vector.load %arg6[%c0_17, %c235] : memref<4x512xf32, #tpu.memory_space<vmem>>, vector<4x16xf32>
    tpu.vector_store %arg6[%c0_17, %c235], %41 {strides = array<i32>} : memref<4x512xf32, #tpu.memory_space<vmem>>, vector<4x16xf32>,
    %43 = vector.extract_strided_slice %3 {offsets = [0, 13, 0], sizes = [4, 1, 16], strides = [1, 1, 1]} : vector<4x16x16xf32> to vector<4x1x16xf32>
    %44 = vector.shape_cast %43 : vector<4x1x16xf32> to vector<4x16xf32>
    %c0_18 = arith.constant 0 : index
    %c253 = arith.constant 253 : index
    %45 = vector.load %arg6[%c0_18, %c253] : memref<4x512xf32, #tpu.memory_space<vmem>>, vector<4x16xf32>
    tpu.vector_store %arg6[%c0_18, %c253], %44 {strides = array<i32>} : memref<4x512xf32, #tpu.memory_space<vmem>>, vector<4x16xf32>,
    %46 = vector.extract_strided_slice %3 {offsets = [0, 14, 0], sizes = [4, 1, 16], strides = [1, 1, 1]} : vector<4x16x16xf32> to vector<4x1x16xf32>
    %47 = vector.shape_cast %46 : vector<4x1x16xf32> to vector<4x16xf32>
    %c0_19 = arith.constant 0 : index
    %c271 = arith.constant 271 : index
    %48 = vector.load %arg6[%c0_19, %c271] : memref<4x512xf32, #tpu.memory_space<vmem>>, vector<4x16xf32>
    tpu.vector_store %arg6[%c0_19, %c271], %47 {strides = array<i32>} : memref<4x512xf32, #tpu.memory_space<vmem>>, vector<4x16xf32>,
    %49 = vector.extract_strided_slice %3 {offsets = [0, 15, 0], sizes = [4, 1, 16], strides = [1, 1, 1]} : vector<4x16x16xf32> to vector<4x1x16xf32>
    %50 = vector.shape_cast %49 : vector<4x1x16xf32> to vector<4x16xf32>
    %c0_20 = arith.constant 0 : index
    %c289 = arith.constant 289 : index
    %51 = vector.load %arg6[%c0_20, %c289] : memref<4x512xf32, #tpu.memory_space<vmem>>, vector<4x16xf32>
    tpu.vector_store %arg6[%c0_20, %c289], %50 {strides = array<i32>} : memref<4x512xf32, #tpu.memory_space<vmem>>, vector<4x16xf32>,
    %c0_21 = arith.constant 0 : index
    %c0_22 = arith.constant 0 : index
    %52 = vector.load %arg6[%c0_21, %c0_22] : memref<4x512xf32, #tpu.memory_space<vmem>>, vector<4x384xf32>
    %c0_23 = arith.constant 0 : index
    %c0_24 = arith.constant 0 : index
    %53 = vector.load %arg7[%c0_23, %c0_24] : memref<36x384xf32, #tpu.memory_space<vmem>>, vector<4x384xf32>
    tpu.vector_store %arg7[%c0_23, %c0_24], %52 {strides = array<i32>} : memref<36x384xf32, #tpu.memory_space<vmem>>, vector<4x384xf32>,
    %c0_25 = arith.constant 0 : index
    %c1 = arith.constant 1 : index
    %54 = vector.load %arg6[%c0_25, %c1] : memref<4x512xf32, #tpu.memory_space<vmem>>, vector<4x384xf32>
    %c4 = arith.constant 4 : index
    %c0_26 = arith.constant 0 : index
    %55 = vector.load %arg7[%c4, %c0_26] : memref<36x384xf32, #tpu.memory_space<vmem>>, vector<4x384xf32>
    tpu.vector_store %arg7[%c4, %c0_26], %54 {strides = array<i32>} : memref<36x384xf32, #tpu.memory_space<vmem>>, vector<4x384xf32>,
    %c0_27 = arith.constant 0 : index
    %c2 = arith.constant 2 : index
    %56 = vector.load %arg6[%c0_27, %c2] : memref<4x512xf32, #tpu.memory_space<vmem>>, vector<4x384xf32>
    %c8 = arith.constant 8 : index
    %c0_28 = arith.constant 0 : index
    %57 = vector.load %arg7[%c8, %c0_28] : memref<36x384xf32, #tpu.memory_space<vmem>>, vector<4x384xf32>
    tpu.vector_store %arg7[%c8, %c0_28], %56 {strides = array<i32>} : memref<36x384xf32, #tpu.memory_space<vmem>>, vector<4x384xf32>,
    %c0_29 = arith.constant 0 : index
    %c18 = arith.constant 18 : index
    %58 = vector.load %arg6[%c0_29, %c18] : memref<4x512xf32, #tpu.memory_space<vmem>>, vector<4x384xf32>
    %c12 = arith.constant 12 : index
    %c0_30 = arith.constant 0 : index
    %59 = vector.load %arg7[%c12, %c0_30] : memref<36x384xf32, #tpu.memory_space<vmem>>, vector<4x384xf32>
    tpu.vector_store %arg7[%c12, %c0_30], %58 {strides = array<i32>} : memref<36x384xf32, #tpu.memory_space<vmem>>, vector<4x384xf32>,
    %c0_31 = arith.constant 0 : index
    %c19_32 = arith.constant 19 : index
    %60 = vector.load %arg6[%c0_31, %c19_32] : memref<4x512xf32, #tpu.memory_space<vmem>>, vector<4x384xf32>
    %c16 = arith.constant 16 : index
    %c0_33 = arith.constant 0 : index
    %61 = vector.load %arg7[%c16, %c0_33] : memref<36x384xf32, #tpu.memory_space<vmem>>, vector<4x384xf32>
    tpu.vector_store %arg7[%c16, %c0_33], %60 {strides = array<i32>} : memref<36x384xf32, #tpu.memory_space<vmem>>, vector<4x384xf32>,
    %c0_34 = arith.constant 0 : index
    %c20 = arith.constant 20 : index
    %62 = vector.load %arg6[%c0_34, %c20] : memref<4x512xf32, #tpu.memory_space<vmem>>, vector<4x384xf32>
    %c20_35 = arith.constant 20 : index
    %c0_36 = arith.constant 0 : index
    %63 = vector.load %arg7[%c20_35, %c0_36] : memref<36x384xf32, #tpu.memory_space<vmem>>, vector<4x384xf32>
    tpu.vector_store %arg7[%c20_35, %c0_36], %62 {strides = array<i32>} : memref<36x384xf32, #tpu.memory_space<vmem>>, vector<4x384xf32>,
    %c0_37 = arith.constant 0 : index
    %c36 = arith.constant 36 : index
    %64 = vector.load %arg6[%c0_37, %c36] : memref<4x512xf32, #tpu.memory_space<vmem>>, vector<4x384xf32>
    %c24 = arith.constant 24 : index
    %c0_38 = arith.constant 0 : index
    %65 = vector.load %arg7[%c24, %c0_38] : memref<36x384xf32, #tpu.memory_space<vmem>>, vector<4x384xf32>
    tpu.vector_store %arg7[%c24, %c0_38], %64 {strides = array<i32>} : memref<36x384xf32, #tpu.memory_space<vmem>>, vector<4x384xf32>,
    %c0_39 = arith.constant 0 : index
    %c37_40 = arith.constant 37 : index
    %66 = vector.load %arg6[%c0_39, %c37_40] : memref<4x512xf32, #tpu.memory_space<vmem>>, vector<4x384xf32>
    %c28 = arith.constant 28 : index
    %c0_41 = arith.constant 0 : index
    %67 = vector.load %arg7[%c28, %c0_41] : memref<36x384xf32, #tpu.memory_space<vmem>>, vector<4x384xf32>
    tpu.vector_store %arg7[%c28, %c0_41], %66 {strides = array<i32>} : memref<36x384xf32, #tpu.memory_space<vmem>>, vector<4x384xf32>,
    %c0_42 = arith.constant 0 : index
    %c38 = arith.constant 38 : index
    %68 = vector.load %arg6[%c0_42, %c38] : memref<4x512xf32, #tpu.memory_space<vmem>>, vector<4x384xf32>
    %c32 = arith.constant 32 : index
    %c0_43 = arith.constant 0 : index
    %69 = vector.load %arg7[%c32, %c0_43] : memref<36x384xf32, #tpu.memory_space<vmem>>, vector<4x384xf32>
    tpu.vector_store %arg7[%c32, %c0_43], %68 {strides = array<i32>} : memref<36x384xf32, #tpu.memory_space<vmem>>, vector<4x384xf32>,
    %c0_44 = arith.constant 0 : index
    %c0_45 = arith.constant 0 : index
    %70 = vector.load %arg2[%c0_44, %c0_45] : memref<8x36xbf16, #tpu.memory_space<vmem>>, vector<8x36xbf16>
    %c0_46 = arith.constant 0 : index
    %c0_47 = arith.constant 0 : index
    %71 = vector.load %arg7[%c0_46, %c0_47] : memref<36x384xf32, #tpu.memory_space<vmem>>, vector<36x384xf32>
    %72 = arith.truncf %71 : vector<36x384xf32> to vector<36x384xbf16>
    %cst_48 = arith.constant dense<0.000000e+00> : vector<8x384xf32>
    %73 = tpu.matmul %70, %72, %cst_48 {dimension_numbers = #tpu.dot_dimension_numbers<[1], [0], [0], [1], [0, 0, 1, 1], [], []>} : vector<8x36xbf16>, vector<36x384xbf16>, vector<8x384xf32> -> vector<8x384xf32>
    %c0_49 = arith.constant 0 : index
    %c0_50 = arith.constant 0 : index
    %74 = vector.load %arg3[%c0_49, %c0_50] : memref<8x1xf32, #tpu.memory_space<vmem>>, vector<8x1xf32>
    %75 = vector.broadcast %74 : vector<8x1xf32> to vector<8x384xf32>
    %76 = arith.mulf %73, %75 : vector<8x384xf32>
    %c0_51 = arith.constant 0 : index
    %c0_52 = arith.constant 0 : index
    %77 = vector.load %arg4[%c0_51, %c0_52] : memref<8x1xf32, #tpu.memory_space<vmem>>, vector<8x1xf32>
    %78 = vector.broadcast %77 : vector<8x1xf32> to vector<8x384xf32>
    %79 = arith.addf %76, %78 : vector<8x384xf32>
    %c0_53 = arith.constant 0 : index
    %c0_54 = arith.constant 0 : index
    %c0_55 = arith.constant 0 : index
    %80 = vector.load %arg5[%c0_53, %c0_54, %c0_55] : memref<1x8x384xf32, #tpu.memory_space<vmem>>, vector<1x8x384xf32>
    %81 = vector.shape_cast %80 : vector<1x8x384xf32> to vector<8x384xf32>
    %82 = vector.shape_cast %79 : vector<8x384xf32> to vector<1x8x384xf32>
    tpu.vector_store %arg5[%c0_53, %c0_54, %c0_55], %82 {strides = array<i32>} : memref<1x8x384xf32, #tpu.memory_space<vmem>>, vector<1x8x384xf32>,
    return
  }
  func.func @transform_0(%arg0: i32) -> (i32, i32, i32, i32) {
    %c0_i32 = arith.constant 0 : i32
    %c0_i32_0 = arith.constant 0 : i32
    %c0_i32_1 = arith.constant 0 : i32
    %c0_i32_2 = arith.constant 0 : i32
    return %arg0, %c0_i32, %c0_i32_0, %c0_i32_1 : i32, i32, i32, i32
  }
  func.func @transform_1(%arg0: i32) -> (i32, i32) {
    %c0_i32 = arith.constant 0 : i32
    %c0_i32_0 = arith.constant 0 : i32
    %c0_i32_1 = arith.constant 0 : i32
    return %c0_i32, %c0_i32_0 : i32, i32
  }
  func.func @transform_2(%arg0: i32) -> (i32, i32) {
    %c0_i32 = arith.constant 0 : i32
    %c0_i32_0 = arith.constant 0 : i32
    %c0_i32_1 = arith.constant 0 : i32
    return %c0_i32, %c0_i32_0 : i32, i32
  }
  func.func @transform_3(%arg0: i32) -> (i32, i32) {
    %c0_i32 = arith.constant 0 : i32
    %c0_i32_0 = arith.constant 0 : i32
    %c0_i32_1 = arith.constant 0 : i32
    return %c0_i32, %c0_i32_0 : i32, i32
  }
  func.func @transform_4(%arg0: i32) -> (i32, i32, i32) {
    %c0_i32 = arith.constant 0 : i32
    %c0_i32_0 = arith.constant 0 : i32
    %c0_i32_1 = arith.constant 0 : i32
    return %arg0, %c0_i32, %c0_i32_0 : i32, i32, i32
  }
}

</mosaic_0001>

<bundles_post_ra>
// kernel: zerodep_conv2d.1
= control target key start
LH: loop header
LB: loop body
LE: loop exit
PB: predicated region body
PF: predicated region fallthrough
CT: control target
= control target key end

     0   :  { %s994_s15 = smov 0   ;;  %s1271_s0 = inlined_call_operand.vmem [shape: f32[2,4,16,16], index: 0, kind: input, shape index: {}]   ;;  %s1272_s1 = inlined_call_operand.vmem [shape: bf16[8,36], index: 1, kind: input, shape index: {}]   ;;  %s1273_s2 = inlined_call_operand.vmem [shape: f32[8,1], index: 2, kind: input, shape index: {}]   ;;  %s1274_s3 = inlined_call_operand.vmem [shape: f32[8,1], index: 3, kind: input, shape index: {}]   ;;  %s1275_s4 = inlined_call_operand.vmem [shape: f32[2,8,384], index: 4, kind: output, shape index: {}]  }
   0x1 LB: > { %s860_s16 = sadd.s32 4294967295, %s942_s15   ;;  %p864_p0 = scmp.ge.s32.totalorder %s942_s15, 1  ;;  %s942_s15 = sphi %s994_s15, %s14_s15  }
   0x2   : > { %p162_p1 = scmp.lt.s32.totalorder %s942_s15, 3 }
   0x4   : > { %p163_p2 = pnand %p864_p0, %p162_p1 }
   0x5   : > { %p188_p3 = scmp.lt.s32.totalorder (!%p163_p2), %s860_s16, 1  ;;  %v944_v0 = vmov (!%p163_p2), 1.0   ;;  %vm214_vm0 = vcmask (!%p163_p2), 1041409   ;;  %vm216_vm1 = vcmask (!%p163_p2), 1045509   ;;  %vm219_vm2 = vcmask (!%p163_p2), 1042434   ;;  %s945_s21 = smov (!%p163_p2), 55  }
   0x6   : > { %166 = sbr.rel (%p163_p2) target bundleno = 587 (0x24b), region = 36  ;;  %199 = vst [vmem:[#allocation2] sm:$0xff] (!%p163_p2), %v944_v0  ;;  %200 = vst [vmem:[#allocation2 + $0x8] sm:$0xff] (!%p163_p2), %v944_v0  ;;  %vm221_vm3 = vcmask (!%p163_p2), 1046534   ;;  %vm224_vm4 = vcmask (!%p163_p2), 1043459   ;;  %vm226_vm5 = vcmask (!%p163_p2), 1047559  }
   0x7   : > { %s946_s22 = smov (!%p163_p2), 19   ;;  %s947_s23 = smov (!%p163_p2), 73   ;;  %vm231_vm6 = vcmask (!%p163_p2), 281752   ;;  %vm245_vm7 = vcmask (!%p163_p2), 429352   ;;  %vm259_vm8 = vcmask (!%p163_p2), 576952   ;;  %vm273_vm9 = vcmask (!%p163_p2), 724552  }
   0x8   : > { %s948_s24 = smov (!%p163_p2), 37   ;;  %s949_s25 = smov (!%p163_p2), 53   ;;  %vm291_vm10 = vcmask (!%p163_p2), 872152   ;;  %vm322_vm11 = vcmask (!%p163_p2), 1044472   ;;  %vm323_vm12 = vcmask (!%p163_p2), 121860   ;;  %vm319_vm13 = vcmask (!%p163_p2), 1039360  }
   0x9   : > { %s950_s26 = smov (!%p163_p2), 35   ;;  %s951_s27 = smov (!%p163_p2), 91   ;;  %vm305_vm14 = vcmask (!%p163_p2), 1019752   ;;  %vm324_vm15 = vmor (!%p163_p2), %vm323_vm12, %vm322_vm11  ;;  %vm463_vm11 = vcmask (!%p163_p2), 396552   ;;  %vm968_vm12 = vmmov (!%p163_p2), 0  }
   0xa   : > { %s952_s28 = smov (!%p163_p2), 127   ;;  %s953_s29 = smov (!%p163_p2), 17  }
   0xb   : > { %s954_s30 = smov (!%p163_p2), 109   ;;  %s955_s5 = smov (!%p163_p2), 125  }
   0xc   : > { %s956_s6 = smov (!%p163_p2), 71   ;;  %s957_s7 = smov (!%p163_p2), 107  }
   0xd   : > { %s1277_s16 = smov (!%p188_p3, %s860_s16), 1  ;;  %s958_s8 = smov 89  }
   0xe   : > { %s873_s17 = sshll.u32 %s1277_s16, 6  ;;  %s959_s9 = smov 15  }
   0xf   : > { %s1008_s20 = scalar_lea.vmem %s1271_s0, %s873_s17  ;;  %s960_s10 = smov 33  }
  0x10   : > { %v201_v1 = vld [vmem:[%s1008_s20] sm:$0xff]  ;;  %v203_v2 = vld [vmem:[%s1008_s20 + $0x10] sm:$0xff]  ;;  %v1033_v29 = vld [vmem:[%s1008_s20 + $0x8] sm:$0xff]  ;;  %s961_s11 = smov 126   ;;  %s962_s12 = smov 110  }
  0x11   : > { %v205_v3 = vld [vmem:[%s1008_s20 + $0x20] sm:$0xff]  ;;  %v1014_v4 = vld [vmem:[%s1008_s20 + $0x30] sm:$0xff]  ;;  %v247_v5 = vrot.slane %v201_v1, 2  ;;  %v248_v6 = vrot.slane %v203_v2, 1  ;;  %v213_v8 = vrot.slane %v203_v2, 7  ;;  %v261_v12 = vrot.slane %v201_v1, 3 }
  0x12   : > { %v1016_v7 = vcombine.high %v205_v3, %v205_v3  ;;  %v253_v9 = vrot.slane %v1014_v4, 7  ;;  %v218_v10 = vrot.slane %v205_v3, 6  ;;  %v223_v11 = vrot.slane %v1014_v4, 5  ;;  %v1036_v30 = vld [vmem:[%s1008_s20 + $0x28] sm:$0xff]  ;;  %v1043_v35 = vld [vmem:[%s1008_s20 + $0x18] sm:$0xff]  ;;  %s963_s13 = smov 108  }
  0x13   : > { %v249_v13 = vsel %vm214_vm0, %v248_v6, %v247_v5  ;;  %v215_v14 = vsel %vm214_vm0, %v213_v8, %v201_v1  ;;  %v262_v15 = vrot.slane %v203_v2, 2  ;;  %v265_v16 = vrot.slane %v205_v3, 1  ;;  %v1046_v36 = vld [vmem:[%s1008_s20 + $0x38] sm:$0xff]  ;;  %s964_s14 = smov 92   ;;  %s965_s17 = smov 90  }
  0x14   : > { %v250_v17 = vsel %vm216_vm1, %v248_v6, %v249_v13  ;;  %v217_v18 = vsel %vm216_vm1, %v213_v8, %v215_v14  ;;  %v233_v19 = vrot.slane %v201_v1, 1  ;;  %v236_v20 = vrot.slane %v205_v3, 7 }
  0x15   : > { %v251_v21 = vsel %vm219_vm2, %v205_v3, %v250_v17  ;;  %v220_v22 = vsel %vm219_vm2, %v218_v10, %v217_v18  ;;  %v263_v23 = vsel %vm214_vm0, %v262_v15, %v261_v12  ;;  %v239_v24 = vrot.slane %v1014_v4, 6 }
  0x16   : > { %v252_v25 = vsel %vm221_vm3, %v205_v3, %v251_v21  ;;  %v222_v26 = vsel %vm221_vm3, %v218_v10, %v220_v22  ;;  %v264_v27 = vsel %vm216_vm1, %v262_v15, %v263_v23  ;;  %v234_v28 = vsel %vm214_vm0, %v203_v2, %v233_v19 }
  0x17   : > { %v254_v31 = vsel %vm224_vm4, %v253_v9, %v252_v25  ;;  %v225_v32 = vsel %vm224_vm4, %v223_v11, %v222_v26  ;;  %v266_v33 = vsel %vm219_vm2, %v265_v16, %v264_v27  ;;  %v235_v34 = vsel %vm216_vm1, %v203_v2, %v234_v28 }
  0x18   : > { %v255_v37 = vsel %vm226_vm5, %v253_v9, %v254_v31  ;;  %v227_v38 = vsel %vm226_vm5, %v223_v11, %v225_v32  ;;  %v267_v39 = vsel %vm221_vm3, %v265_v16, %v266_v33  ;;  %v237_v40 = vsel %vm219_vm2, %v236_v20, %v235_v34 }
  0x19   : > { %256 = vrot.lane.b32.xlu1 %v255_v37, %s945_s21  ;;  %228 = vrot.lane.b32.xlu0 %v227_v38, %s946_s22  ;;  %v268_v41 = vsel %vm224_vm4, %v1014_v4, %v267_v39  ;;  %v238_v42 = vsel %vm221_vm3, %v236_v20, %v237_v40  ;;  %v358_v43 = vrot.slane %v1033_v29, 1  ;;  %v361_v44 = vrot.slane %v1036_v30, 7 }
  0x1a   : > { %v269_v45 = vsel %vm226_vm5, %v1014_v4, %v268_v41  ;;  %v240_v46 = vsel %vm224_vm4, %v239_v24, %v238_v42  ;;  %v364_v47 = vrot.slane %v1046_v36, 6  ;;  %v344_v48 = vrot.slane %v1043_v35, 7 }
  0x1b   : > { %v241_v49 = vsel %vm226_vm5, %v239_v24, %v240_v46  ;;  %v359_v50 = vsel %vm214_vm0, %v1043_v35, %v358_v43  ;;  %v347_v51 = vrot.slane %v1036_v30, 6  ;;  %v350_v52 = vrot.slane %v1046_v36, 5 }
  0x1c   : > { %v360_v53 = vsel %vm216_vm1, %v1043_v35, %v359_v50  ;;  %v345_v54 = vsel %vm214_vm0, %v344_v48, %v1033_v29  ;;  %v275_v55 = vcombine.high %v201_v1, %v201_v1  ;;  %v276_v56 = vcombine.high %v203_v2, %v203_v2 }
  0x1d   : > { %270 = vrot.lane.b32.xlu1 %v269_v45, %s947_s23  ;;  %242 = vrot.lane.b32.xlu0 %v241_v49, %s948_s24  ;;  %v362_v57 = vsel %vm219_vm2, %v361_v44, %v360_v53  ;;  %v346_v58 = vsel %vm216_vm1, %v344_v48, %v345_v54  ;;  %v278_v59 = vcombine.high %v1014_v4, %v1014_v4  ;;  %v282_v60 = vrot.slane %v1016_v7, 6  ;;  %s888_s24 = smul.u32 24, %s1277_s16 }
  0x1e   : > { %v363_v61 = vsel %vm221_vm3, %v361_v44, %v362_v57  ;;  %v348_v62 = vsel %vm219_vm2, %v347_v51, %v346_v58  ;;  %v279_v63 = vrot.slane %v276_v56, 7  ;;  %v307_v0 = vrot.slane %v275_v55, 2 }
  0x1f   : > { %v365_v1 = vsel %vm224_vm4, %v364_v47, %v363_v61  ;;  %v349_v2 = vsel %vm221_vm3, %v347_v51, %v348_v62  ;;  %v285_v3 = vrot.slane %v278_v59, 5  ;;  %v308_v5 = vrot.slane %v276_v56, 1 }
  0x20   : > { %v366_v6 = vsel %vm226_vm5, %v364_v47, %v365_v1  ;;  %v351_v8 = vsel %vm224_vm4, %v350_v52, %v349_v2  ;;  %v280_v4 = vsel %vm214_vm0, %v279_v63, %v275_v55  ;;  %v313_v9 = vrot.slane %v278_v59, 7 }
  0x21   : > { %367 = vrot.lane.b32.xlu1 %v366_v6, %s949_s25  ;;  %v352_v10 = vsel %vm226_vm5, %v350_v52, %v351_v8  ;;  %v281_v11 = vsel %vm216_vm1, %v279_v63, %v280_v4  ;;  %v309_v12 = vsel %vm214_vm0, %v308_v5, %v307_v0  ;;  %v326_v13 = vrot.slane %v275_v55, 3 }
  0x22   : > { %353 = vrot.lane.b32.xlu0 %v352_v10, %s950_s26  ;;  %v283_v14 = vsel %vm219_vm2, %v282_v60, %v281_v11  ;;  %v310_v15 = vsel %vm216_vm1, %v308_v5, %v309_v12  ;;  %v327_v16 = vrot.slane %v276_v56, 2  ;;  %v330_v17 = vrot.slane %v1016_v7, 1 }
  0x23   : > { %v284_v18 = vsel %vm221_vm3, %v282_v60, %v283_v14  ;;  %v311_v19 = vsel %vm219_vm2, %v1016_v7, %v310_v15  ;;  %v293_v20 = vrot.slane %v275_v55, 1  ;;  %v296_v21 = vrot.slane %v1016_v7, 7 }
  0x24   : > { %v286_v22 = vsel %vm224_vm4, %v285_v3, %v284_v18  ;;  %v312_v23 = vsel %vm221_vm3, %v1016_v7, %v311_v19  ;;  %v328_v24 = vsel %vm214_vm0, %v327_v16, %v326_v13  ;;  %v299_v25 = vrot.slane %v278_v59, 6 }
  0x25   : > { %v287_v26 = vsel %vm226_vm5, %v285_v3, %v286_v22  ;;  %v314_v27 = vsel %vm224_vm4, %v313_v9, %v312_v23  ;;  %v329_v28 = vsel %vm216_vm1, %v327_v16, %v328_v24  ;;  %v294_v31 = vsel %vm214_vm0, %v276_v56, %v293_v20 }
  0x26   : > { %288 = vrot.lane.b32.xlu1 %v287_v26, %s951_s27  ;;  %v315_v32 = vsel %vm226_vm5, %v313_v9, %v314_v27  ;;  %v331_v33 = vsel %vm219_vm2, %v330_v17, %v329_v28  ;;  %v295_v7 = vsel %vm216_vm1, %v276_v56, %v294_v31  ;;  %v1107_v34 = vcombine.high %v1033_v29, %v1033_v29 }
  0x27   : > { %316 = vrot.lane.b32.xlu0 %v315_v32, %s952_s28  ;;  %v332_v37 = vsel %vm221_vm3, %v330_v17, %v331_v33  ;;  %v297_v38 = vsel %vm219_vm2, %v296_v21, %v295_v7  ;;  %v1114_v39 = vcombine.high %v1043_v35, %v1043_v35  ;;  %v1118_v40 = vcombine.high %v1036_v30, %v1036_v30 }
  0x28   : > { %v333_v41 = vsel %vm224_vm4, %v278_v59, %v332_v37  ;;  %v298_v42 = vsel %vm221_vm3, %v296_v21, %v297_v38  ;;  %v1124_v43 = vcombine.high %v1046_v36, %v1046_v36  ;;  %v418_v44 = vrot.slane %v1107_v34, 1 }
  0x29   : > { %v334_v45 = vsel %vm226_vm5, %v278_v59, %v333_v41  ;;  %v300_v46 = vsel %vm224_vm4, %v299_v25, %v298_v42  ;;  %v421_v47 = vrot.slane %v1118_v40, 7  ;;  %v372_v48 = vrot.slane %v1033_v29, 2 }
  0x2a   : > { %335 = vrot.lane.b32.xlu1 %v334_v45, %s953_s29  ;;  %v301_v49 = vsel %vm226_vm5, %v299_v25, %v300_v46  ;;  %v419_v50 = vsel %vm214_vm0, %v1114_v39, %v418_v44  ;;  %v424_v51 = vrot.slane %v1124_v43, 6  ;;  %v373_v52 = vrot.slane %v1043_v35, 1 }
  0x2b   : > { %302 = vrot.lane.b32.xlu0 %v301_v49, %s954_s30  ;;  %v420_v53 = vsel %vm216_vm1, %v1114_v39, %v419_v50  ;;  %v378_v54 = vrot.slane %v1046_v36, 7  ;;  %v386_v55 = vrot.slane %v1033_v29, 3  ;;  %v387_v56 = vrot.slane %v1043_v35, 2 }
  0x2c   : > { %v422_v57 = vsel %vm219_vm2, %v421_v47, %v420_v53  ;;  %v374_v58 = vsel %vm214_vm0, %v373_v52, %v372_v48  ;;  %v390_v59 = vrot.slane %v1036_v30, 1  ;;  %v404_v60 = vrot.slane %v1114_v39, 7 }
  0x2d   : > { %v423_v61 = vsel %vm221_vm3, %v421_v47, %v422_v57  ;;  %v375_v62 = vsel %vm216_vm1, %v373_v52, %v374_v58  ;;  %v388_v63 = vsel %vm214_vm0, %v387_v56, %v386_v55  ;;  %v407_v0 = vrot.slane %v1118_v40, 6 }
  0x2e   : > { %v425_v29 = vsel %vm224_vm4, %v424_v51, %v423_v61  ;;  %v376_v35 = vsel %vm219_vm2, %v1036_v30, %v375_v62  ;;  %v389_v1 = vsel %vm216_vm1, %v387_v56, %v388_v63  ;;  %v405_v2 = vsel %vm214_vm0, %v404_v60, %v1107_v34 }
  0x2f   : > { %v426_v3 = vsel %vm226_vm5, %v424_v51, %v425_v29  ;;  %v377_v5 = vsel %vm221_vm3, %v1036_v30, %v376_v35  ;;  %v391_v6 = vsel %vm219_vm2, %v390_v59, %v389_v1  ;;  %v406_v8 = vsel %vm216_vm1, %v404_v60, %v405_v2  ;;  %v784_v35 = vld [vmem:[%s1273_s2] sm:$0xff] }
  0x30   : > { %427 = vrot.lane.b32.xlu1 %v426_v3, %s955_s5  ;;  %v379_v4 = vsel %vm224_vm4, %v378_v54, %v377_v5  ;;  %v392_v9 = vsel %vm221_vm3, %v390_v59, %v391_v6  ;;  %v408_v10 = vsel %vm219_vm2, %v407_v0, %v406_v8  ;;  %v410_v11 = vrot.slane %v1124_v43, 5  ;;  %v793_v1 = vld [vmem:[%s1274_s3] sm:$0xff] }
  0x31   : > { %v380_v12 = vsel %vm226_vm5, %v378_v54, %v379_v4  ;;  %v393_v13 = vsel %vm224_vm4, %v1046_v36, %v392_v9  ;;  %v409_v30 = vsel %vm221_vm3, %v407_v0, %v408_v10  ;;  %v437_v14 = vrot.slane %v1107_v34, 2 }
  0x32   : > { %381 = vrot.lane.b32.xlu0 %v380_v12, %s956_s6  ;;  %v394_v15 = vsel %vm226_vm5, %v1046_v36, %v393_v13  ;;  %v411_v16 = vsel %vm224_vm4, %v410_v11, %v409_v30  ;;  %v438_v17 = vrot.slane %v1114_v39, 1  ;;  %v451_v19 = vrot.slane %v1107_v34, 3 }
  0x33   : > { %v412_v18 = vsel %vm226_vm5, %v410_v11, %v411_v16  ;;  %v452_v20 = vrot.slane %v1114_v39, 2  ;;  %v455_v21 = vrot.slane %v1118_v40, 1  ;;  %v443_v23 = vrot.slane %v1124_v43, 7 }
  0x34   : > { %413 = vrot.lane.b32.xlu1 %v412_v18, %s957_s7  ;;  %v439_v22 = vsel %vm214_vm0, %v438_v17, %v437_v14  ;;  %v966_v63 = vmov 0.0   ;;  %v967_v29 = vmov 0  }
  0x35   : > { %v440_v36 = vsel %vm216_vm1, %v438_v17, %v439_v22  ;;  %v453_v24 = vsel %vm214_vm0, %v452_v20, %v451_v19  ;;  %vm338_vm0 = vcmask 265352   ;;  %878 = vmatprep.subr.bf16.mxu1 %v966_v63  ;;  %735 = vmatprep.mubr.bf16.mxu0 %v967_v29 }
  0x36   : > { %395 = vrot.lane.b32.xlu0 %v394_v15, %s958_s8  ;;  %v441_v25 = vsel %vm219_vm2, %v1118_v40, %v440_v36  ;;  %v454_v26 = vsel %vm216_vm1, %v452_v20, %v453_v24  ;;  %vm356_vm1 = vcmask 412952   ;;  %884 = vmatprep.mubr.msk.bf16.mxu1 %vm968_vm12, %v966_v63 }
  0x37   : > { %v442_v27 = vsel %vm221_vm3, %v1118_v40, %v441_v25  ;;  %v456_v28 = vsel %vm219_vm2, %v455_v21, %v454_v26  ;;  %vm370_vm2 = vcmask 560552   ;;  %922 = vset.pattern.permute.xlu0 %v967_v29  ;;  %923 = vset.pattern.permute.xlu1 %v967_v29 }
  0x38   : > { %v444_v31 = vsel %vm224_vm4, %v443_v23, %v442_v27  ;;  %v457_v32 = vsel %vm221_vm3, %v455_v21, %v456_v28  ;;  %vm384_vm3 = vcmask 708152  }
  0x39   : > { %v445_v33 = vsel %vm226_vm5, %v443_v23, %v444_v31  ;;  %v458_v7 = vsel %vm224_vm4, %v1124_v43, %v457_v32  ;;  %vm433_vm4 = vcmask 1044456  }
  0x3a   : > { %446 = vrot.lane.b32.xlu0 %v445_v33, %s959_s9  ;;  %v459_v34 = vsel %vm226_vm5, %v1124_v43, %v458_v7  ;;  %vm434_vm5 = vcmask 105476  }
  0x3b   : > { %460 = vrot.lane.b32.xlu1 %v459_v34, %s960_s10 }
  0x8b   : > { %v257_v37 = vpop.permute.xlu1 %256  ;;  %v229_v38 = vpop.permute.xlu0 %228 }
  0x8c   : > { %232 = vst.msk [vmem:[#allocation2] sm:$0xf] %vm231_vm6, %v229_v38  ;;  %vm398_vm6 = vcmask 855752  }
  0x8f   : > { %v271_v39 = vpop.permute.xlu1 %270  ;;  %v243_v40 = vpop.permute.xlu0 %242 }
  0x90   : > { %246 = vst.msk [vmem:[#allocation2] sm:$0xf] %vm245_vm7, %v243_v40  ;;  %vm430_vm7 = vcmask 1022976  }
  0x91   : > { %260 = vst.msk [vmem:[#allocation2] sm:$0xf] %vm259_vm8, %v257_v37  ;;  %vm416_vm8 = vcmask 1003352  }
  0x92   : > { %274 = vst.msk [vmem:[#allocation2] sm:$0xf] %vm273_vm9, %v271_v39  ;;  %vm435_vm9 = vmor %vm434_vm5, %vm433_vm4  ;;  %vm693_vm4 = vcmask 1041408   ;;  %vm689_vm5 = vcmask 293888  }
  0x93   : > { %v368_v41 = vpop.permute.xlu1 %367 }
  0x94   : > { %v354_v42 = vpop.permute.xlu0 %353 }
  0x98   : > { %v289_v44 = vpop.permute.xlu1 %288 }
  0x99   : > { %292 = vst.msk [vmem:[#allocation2] sm:$0xf] %vm291_vm10, %v289_v44  ;;  %v317_v43 = vpop.permute.xlu0 %316  ;;  %vm449_vm10 = vcmask 248952  }
  0x9a   : > { %v318_v45 = vrot.slane %v317_v43, 4 }
  0x9c   : > { %v336_v46 = vpop.permute.xlu1 %335  ;;  %v320_v48 = vsel %vm319_vm13, %v318_v45, %v317_v43 }
  0x9d   : > { %v303_v47 = vpop.permute.xlu0 %302 }
  0x9e   : > { %306 = vst.msk [vmem:[#allocation2] sm:$0xf] %vm305_vm14, %v303_v47  ;;  %vm582_vm14 = vcmask 883712  }
  0x9f   : > { %325 = vst.msk [vmem:[#allocation2] sm:$0xff] %vm324_vm15, %v320_v48  ;;  %vm630_vm15 = vcmask 744448  }
  0xa0   : > { %339 = vst.msk [vmem:[#allocation2 + $0x4] sm:$0xf] %vm338_vm0, %v336_v46  ;;  %vm510_vm0 = vcmask 1031168  }
  0xa1   : > { %357 = vst.msk [vmem:[#allocation2 + $0x4] sm:$0xf] %vm356_vm1, %v354_v42  ;;  %vm534_vm1 = vcmask 900096  }
  0xa2   : > { %v428_v49 = vpop.permute.xlu1 %427  ;;  %371 = vst.msk [vmem:[#allocation2 + $0x4] sm:$0xf] %vm370_vm2, %v368_v41  ;;  %vm558_vm2 = vcmask 891904  }
  0xa3   : > { %v429_v51 = vrot.slane %v428_v49, 4 }
  0xa4   : > { %v382_v50 = vpop.permute.xlu0 %381 }
  0xa5   : > { %385 = vst.msk [vmem:[#allocation2 + $0x4] sm:$0xf] %vm384_vm3, %v382_v50  ;;  %v431_v54 = vsel %vm430_vm7, %v429_v51, %v428_v49  ;;  %vm606_vm3 = vcmask 752640  }
  0xa6   : > { %v414_v52 = vpop.permute.xlu1 %413 }
  0xa8   : > { %v396_v53 = vpop.permute.xlu0 %395 }
  0xa9   : > { %399 = vst.msk [vmem:[#allocation2 + $0x4] sm:$0xf] %vm398_vm6, %v396_v53 }
  0xaa   : > { %417 = vst.msk [vmem:[#allocation2 + $0x4] sm:$0xf] %vm416_vm8, %v414_v52 }
  0xab   : > { %436 = vst.msk [vmem:[#allocation2 + $0x4] sm:$0xff] %vm435_vm9, %v431_v54 }
  0xac   : > { %v447_v55 = vpop.permute.xlu0 %446 }
  0xad   : > { %450 = vst.msk [vmem:[#allocation2 + $0x8] sm:$0xf] %vm449_vm10, %v447_v55  ;;  %v461_v56 = vpop.permute.xlu1 %460 }
  0xae   : > { %464 = vst.msk [vmem:[#allocation2 + $0x8] sm:$0xf] %vm463_vm11, %v461_v56 }
  0xb2   : > { %v496_v57 = vld [vmem:[#allocation2] sm:$0xff] }
  0xb3   : > { %502 = vrot.lane.b32.xlu1 %v496_v57, %s961_s11  ;;  %v500_v58 = vcombine.high %v496_v57, %v496_v57  ;;  %481 = vrot.lane.b32.xlu0 %v496_v57, %s952_s28  ;;  %470 = vst [vmem:[#allocation3] sm:$0xf] %v496_v57  ;;  %v477_v61 = vcombine.low %v496_v57, %v496_v57 }
  0xb5   : > { %v466_v59 = vld [vmem:[#allocation2 + $0x8] sm:$0xf]  ;;  %471 = vst [vmem:[#allocation3 + $0x8] sm:$0xf] %v500_v58 }
  0xb6   : > { %v497_v60 = vld [vmem:[#allocation2 + $0x8] sm:$0xff]  ;;  %472 = vst [vmem:[#allocation3 + $0x10] sm:$0xf] %v466_v59 }
  0xb7   : > { %528 = vrot.lane.b32.xlu0 %v496_v57, %s962_s12  ;;  %506 = vrot.lane.b32.xlu1 %v497_v60, %s961_s11  ;;  %v478_v62 = vcombine.low %v497_v60, %v497_v60  ;;  %v501_v0 = vcombine.high %v497_v60, %v497_v60 }
  0xbb   : > { %576 = vrot.lane.b32.xlu0 %v496_v57, %s963_s13  ;;  %485 = vrot.lane.b32.xlu1 %v497_v60, %s952_s28 }
  0xbf   : > { %624 = vrot.lane.b32.xlu0 %v496_v57, %s951_s27  ;;  %532 = vrot.lane.b32.xlu1 %v497_v60, %s962_s12 }
  0xc3   : > { %550 = vrot.lane.b32.xlu0 %v496_v57, %s954_s30  ;;  %554 = vrot.lane.b32.xlu1 %v497_v60, %s954_s30 }
  0xc7   : > { %598 = vrot.lane.b32.xlu0 %v496_v57, %s964_s14  ;;  %602 = vrot.lane.b32.xlu1 %v497_v60, %s964_s14 }
  0xcb   : > { %646 = vrot.lane.b32.xlu0 %v496_v57, %s965_s17  ;;  %574 = vrot.lane.b32.xlu1 %v477_v61, %s963_s13 }
  0xcf   : > { %504 = vrot.lane.b32.xlu0 %v500_v58, %s961_s11  ;;  %622 = vrot.lane.b32.xlu1 %v477_v61, %s951_s27 }
  0xd3   : > { %479 = vrot.lane.b32.xlu0 %v477_v61, %s952_s28  ;;  %580 = vrot.lane.b32.xlu1 %v497_v60, %s963_s13 }
  0xd7   : > { %526 = vrot.lane.b32.xlu0 %v477_v61, %s962_s12  ;;  %628 = vrot.lane.b32.xlu1 %v497_v60, %s951_s27 }
  0xdb   : > { %552 = vrot.lane.b32.xlu0 %v500_v58, %s954_s30  ;;  %483 = vrot.lane.b32.xlu1 %v478_v62, %s952_s28 }
  0xdf   : > { %600 = vrot.lane.b32.xlu0 %v500_v58, %s964_s14  ;;  %530 = vrot.lane.b32.xlu1 %v478_v62, %s962_s12 }
  0xe3   : > { %508 = vrot.lane.b32.xlu0 %v501_v0, %s961_s11  ;;  %578 = vrot.lane.b32.xlu1 %v478_v62, %s963_s13 }
  0xe7   : > { %556 = vrot.lane.b32.xlu0 %v501_v0, %s954_s30  ;;  %626 = vrot.lane.b32.xlu1 %v478_v62, %s951_s27  ;;  %s197_s27 = scalar_lea.vmem %s1275_s4, %s888_s24 }
  0xeb   : > { %604 = vrot.lane.b32.xlu0 %v501_v0, %s964_s14  ;;  %648 = vrot.lane.b32.xlu1 %v500_v58, %s965_s17 }
  0xef   : > { %650 = vrot.lane.b32.xlu0 %v497_v60, %s965_s17  ;;  %652 = vrot.lane.b32.xlu1 %v501_v0, %s965_s17 }
  0xf3   : > { %787 = vperm.xlu0 %922, %v784_v35   ;;  %796 = vperm.xlu1 %923, %v793_v1  }
 0x125   : > { %v503_v2 = vpop.permute.xlu1 %502  ;;  %v482_v3 = vpop.permute.xlu0 %481 }
 0x129   : > { %v507_v5 = vpop.permute.xlu1 %506  ;;  %v529_v6 = vpop.permute.xlu0 %528 }
 0x12d   : > { %v486_v8 = vpop.permute.xlu1 %485  ;;  %v577_v4 = vpop.permute.xlu0 %576 }
 0x131   : > { %v533_v9 = vpop.permute.xlu1 %532  ;;  %v1220_v10 = vpop.permute.xlu0 %624 }
 0x135   : > { %v1222_v11 = vpop.permute.xlu1 %554  ;;  %v551_v12 = vpop.permute.xlu0 %550 }
 0x139   : > { %v1224_v13 = vpop.permute.xlu1 %602  ;;  %v599_v30 = vpop.permute.xlu0 %598 }
 0x13d   : > { %v575_v14 = vpop.permute.xlu1 %574  ;;  %v1226_v15 = vpop.permute.xlu0 %646 }
 0x13e   : > { %v583_v16 = vsel %vm582_vm14, %v575_v14, %v577_v4 }
 0x13f   : > { %589 = vst [vmem:[#allocation3 + $0x30] sm:$0xf0] %v583_v16 }
 0x141   : > { %v623_v17 = vpop.permute.xlu1 %622  ;;  %v505_v18 = vpop.permute.xlu0 %504 }
 0x142   : > { %v631_v19 = vsel %vm630_vm15, %v623_v17, %v1220_v10  ;;  %v511_v20 = vsel %vm510_vm0, %v503_v2, %v505_v18  ;;  %v512_v21 = vsel %vm510_vm0, %v505_v18, %v507_v5 }
 0x143   : > { %637 = vst [vmem:[#allocation3 + $0x48] sm:$0xf0] %v631_v19  ;;  %517 = vst [vmem:[#allocation3 + $0x18] sm:$0xf] %v511_v20 }
 0x144   : > { %518 = vst [vmem:[#allocation3 + $0x20] sm:$0xf] %v512_v21  ;;  %v664_v21 = vld [vmem:[%s1272_s1] sm:$0xf] }
 0x145   : > { %v581_v22 = vpop.permute.xlu1 %580  ;;  %v480_v23 = vpop.permute.xlu0 %479 }
 0x146   : > { %v487_v36 = vsel %vm319_vm13, %v480_v23, %v482_v3 }
 0x147   : > { %493 = vst [vmem:[#allocation3] sm:$0xf0] %v487_v36 }
 0x149   : > { %v629_v24 = vpop.permute.xlu1 %628  ;;  %v527_v25 = vpop.permute.xlu0 %526 }
 0x14a   : > { %v535_v26 = vsel %vm534_vm1, %v527_v25, %v529_v6 }
 0x14b   : > { %541 = vst [vmem:[#allocation3 + $0x18] sm:$0xf0] %v535_v26 }
 0x14d   : > { %v484_v27 = vpop.permute.xlu1 %483  ;;  %v553_v28 = vpop.permute.xlu0 %552 }
 0x14e   : > { %v488_v31 = vsel %vm319_vm13, %v482_v3, %v484_v27  ;;  %v489_v32 = vsel %vm319_vm13, %v484_v27, %v486_v8  ;;  %v559_v33 = vsel %vm558_vm2, %v551_v12, %v553_v28  ;;  %v560_v7 = vsel %vm558_vm2, %v553_v28, %v1222_v11  ;;  %v665_v56 = vld [vmem:[#allocation3] sm:$0xff] }
 0x14f   : > { %494 = vst [vmem:[#allocation3 + $0x8] sm:$0xf0] %v488_v31  ;;  %495 = vst [vmem:[#allocation3 + $0x10] sm:$0xf0] %v489_v32  ;;  %vm654_vm13 = vcmask 736256  }
 0x150   : > { %565 = vst [vmem:[#allocation3 + $0x30] sm:$0xf] %v559_v33  ;;  %566 = vst [vmem:[#allocation3 + $0x38] sm:$0xf] %v560_v7 }
 0x151   : > { %v531_v34 = vpop.permute.xlu1 %530  ;;  %v601_v37 = vpop.permute.xlu0 %600 }
 0x152   : > { %v536_v38 = vsel %vm534_vm1, %v529_v6, %v531_v34  ;;  %v537_v39 = vsel %vm534_vm1, %v531_v34, %v533_v9  ;;  %v607_v40 = vsel %vm606_vm3, %v599_v30, %v601_v37  ;;  %v608_v41 = vsel %vm606_vm3, %v601_v37, %v1224_v13  ;;  %v668_v49 = vld [vmem:[#allocation3 + $0x18] sm:$0xff] }
 0x153   : > { %542 = vst [vmem:[#allocation3 + $0x20] sm:$0xf0] %v536_v38  ;;  %543 = vst [vmem:[#allocation3 + $0x28] sm:$0xf0] %v537_v39  ;;  %v680_v57 = vpack.c.bf16 %v668_v49, %v665_v56 }
 0x154   : > { %613 = vst [vmem:[#allocation3 + $0x48] sm:$0xf] %v607_v40  ;;  %614 = vst [vmem:[#allocation3 + $0x50] sm:$0xf] %v608_v41 }
 0x155   : > { %v579_v42 = vpop.permute.xlu1 %578  ;;  %v509_v44 = vpop.permute.xlu0 %508 }
 0x156   : > { %v584_v43 = vsel %vm582_vm14, %v577_v4, %v579_v42  ;;  %v585_v45 = vsel %vm582_vm14, %v579_v42, %v581_v22  ;;  %v513_v46 = vsel %vm510_vm0, %v507_v5, %v509_v44  ;;  %v666_v53 = vld [vmem:[#allocation3 + $0x8] sm:$0xff]  ;;  %v667_v62 = vld [vmem:[#allocation3 + $0x10] sm:$0xff] }
 0x157   : > { %590 = vst [vmem:[#allocation3 + $0x38] sm:$0xf0] %v584_v43  ;;  %591 = vst [vmem:[#allocation3 + $0x40] sm:$0xf0] %v585_v45  ;;  %v671_v9 = vld [vmem:[#allocation3 + $0x30] sm:$0xff] }
 0x158   : > { %519 = vst [vmem:[#allocation3 + $0x28] sm:$0xf] %v513_v46 }
 0x159   : > { %v627_v47 = vpop.permute.xlu1 %626  ;;  %v557_v48 = vpop.permute.xlu0 %556 }
 0x15a   : > { %v632_v50 = vsel %vm630_vm15, %v1220_v10, %v627_v47  ;;  %v633_v51 = vsel %vm630_vm15, %v627_v47, %v629_v24  ;;  %v561_v52 = vsel %vm558_vm2, %v1222_v11, %v557_v48  ;;  %v669_v54 = vld [vmem:[#allocation3 + $0x20] sm:$0xff] }
 0x15b   : > { %638 = vst [vmem:[#allocation3 + $0x50] sm:$0xf0] %v632_v50  ;;  %639 = vst [vmem:[#allocation3 + $0x58] sm:$0xf0] %v633_v51  ;;  %v681_v55 = vpack.c.bf16 %v669_v54, %v666_v53  ;;  %v674_v2 = vld [vmem:[#allocation3 + $0x48] sm:$0xff] }
 0x15c   : > { %567 = vst [vmem:[#allocation3 + $0x40] sm:$0xf] %v561_v52  ;;  %v683_v10 = vpack.c.bf16 %v674_v2, %v671_v9 }
 0x15d   : > { %v649_v58 = vpop.permute.xlu1 %648  ;;  %703 = vmatprep.subr.bf16.mxu0 %v681_v55  ;;  %v605_v59 = vpop.permute.xlu0 %604 }
 0x15e   : > { %v655_v60 = vsel %vm654_vm13, %v1226_v15, %v649_v58  ;;  %v609_v61 = vsel %vm606_vm3, %v1224_v13, %v605_v59  ;;  %704 = vmatpush1.bf16.msra.mxu0 %v680_v57  ;;  %v672_v6 = vld [vmem:[#allocation3 + $0x38] sm:$0xff] }
 0x15f   : > { %v670_v0 = vld [vmem:[#allocation3 + $0x28] sm:$0xff]  ;;  %661 = vst [vmem:[#allocation3 + $0x60] sm:$0xf] %v655_v60  ;;  %615 = vst [vmem:[#allocation3 + $0x58] sm:$0xf] %v609_v61 }
 0x160   : > { %v682_v29 = vpack.c.bf16 %v670_v0, %v667_v62 }
 0x161   : > { %v653_v35 = vpop.permute.xlu1 %652  ;;  %v651_v1 = vpop.permute.xlu0 %650 }
 0x162   : > { %879 = vmatpush3.bf16.msra.mxu1 %v682_v29  ;;  %v656_v3 = vsel %vm654_vm13, %v649_v58, %v651_v1  ;;  %v657_v5 = vsel %vm654_vm13, %v651_v1, %v653_v35  ;;  %v675_v8 = vld [vmem:[#allocation3 + $0x50] sm:$0xff] }
 0x163   : > { %880 = vmatprep.subr.bf16.mxu1 %v966_v63  ;;  %662 = vst [vmem:[#allocation3 + $0x68] sm:$0xf] %v656_v3  ;;  %663 = vst [vmem:[#allocation3 + $0x70] sm:$0xf] %v657_v5  ;;  %v684_v4 = vpack.c.bf16 %v675_v8, %v672_v6  ;;  %v673_v11 = vld [vmem:[#allocation3 + $0x40] sm:$0xff] }
 0x165   : > { %705 = vmatprep.subr.bf16.mxu0 %v684_v4 }
 0x166   : > { %706 = vmatpush1.bf16.msra.mxu0 %v683_v10  ;;  %v676_v12 = vld [vmem:[#allocation3 + $0x58] sm:$0xff]  ;;  %v677_v13 = vld [vmem:[#allocation3 + $0x60] sm:$0xf] }
 0x167   : > { %v685_v30 = vpack.c.bf16 %v676_v12, %v673_v11  ;;  %v686_v14 = vpack.c.bf16 %v677_v13, %v677_v13 }
 0x169   : > { %881 = vmatpush3.bf16.msra.mxu1 %v685_v30  ;;  %v695_v19 = vsel %vm693_vm4, %v686_v14, 0 }
 0x16a   : > { %v678_v15 = vld [vmem:[#allocation3 + $0x68] sm:$0xf]  ;;  %882 = vmatprep.subr.bf16.mxu1 %v966_v63  ;;  %v679_v16 = vld [vmem:[#allocation3 + $0x70] sm:$0xf] }
 0x16b   : > { %v687_v17 = vpack.c.bf16 %v678_v15, %v678_v15  ;;  %v688_v18 = vpack.c.bf16 %v679_v16, %v679_v16 }
 0x16d   : > { %868 = vmatprep.subr.msk.bf16.mxu0 %vm693_vm4, %v687_v17  ;;  %v701_v20 = vsel %vm693_vm4, %v688_v18, 0 }
 0x16e   : > { %708 = vmatpush1.bf16.msra.mxu0 %v695_v19  ;;  %883 = vmatpush3.bf16.msra.mxu1 %v701_v20 }
 0x171   : > { %869 = vmatmul.mubr.msk.bf16.vlgmr.msra.gmra.mrb[0].mxu0 %vm689_vm5, %v664_v21  ;;  %885 = vmatmul.mubr.msk.bf16.vlgmr.msra.gmra.mrb[0].mxu1 %vm689_vm5, %v664_v21 }
 0x172   : > { %v788_v22 = vpop.permute.xlu0 %787  ;;  %v797_v23 = vpop.permute.xlu1 %796 }
 0x244   : > { %v737_v36 = vpop.f32.mrb[0].mxu0  ;;  %v778_v63 = vpop.f32.mrb[0].mxu1 }
 0x245   : > { %v790_v24 = vmul.f32 %v788_v22, %v737_v36  ;;  %v792_v25 = vmul.f32 %v788_v22, %v778_v63  ;;  %v739_v26 = vpop.f32.mrb[1].mxu0  ;;  %v886_v27 = vpop.f32.mrb[1].mxu1 }
 0x246   : > { %v791_v28 = vmul.f32 %v788_v22, %v739_v26  ;;  %v741_v31 = vpop.f32.mrb[2].mxu0  ;;  %v781_v32 = vpop.f32.mrb[2].mxu1 }
 0x247   : > { %v799_v33 = vadd.f32 %v797_v23, %v790_v24  ;;  %v801_v7 = vadd.f32 %v797_v23, %v792_v25  ;;  %v742_v34 = vpop.f32.mrb[3].mxu0  ;;  %v887_v37 = vpop.f32.mrb[3].mxu1 }
 0x248   : > { %v800_v38 = vadd.f32 %v797_v23, %v791_v28 }
 0x249   : > { %802 = vst [vmem:[%s197_s27] sm:$0xff] %v799_v33  ;;  %804 = vst [vmem:[%s197_s27 + $0x10] sm:$0xff] %v801_v7 }
 0x24a   : > { %803 = vst [vmem:[%s197_s27 + $0x8] sm:$0xff] %v800_v38 }
 0x24b PF: > { %s14_s15 = sadd.s32 1, %s942_s15  }
 0x24c   : > { %p11_p4 = scmp.ge.s32.totalorder %s14_s15, 4  }
 0x24e   :  { %13 = sbr.rel (!%p11_p4) target bundleno = 1 (0x1), region = 66 }

</bundles_post_ra>
